<compile_context>
chip_gen: v6e
topology: v6e:2x2x1
jax: 0.10.0
libtpu: 0.0.40
codegen_flags: <defaults>
</compile_context>

<pallas_src>
import functools

import jax
import jax.numpy as jnp
from jax.experimental import pallas as pl
from jax.experimental.pallas import tpu as pltpu

# Example hyper-parameters (nx is a module-level global in the PyTorch source).
NX = 16
NPROFILES = 4
NACTUATORS = 8
T_STEPS = 8
BATCH = 2

_LANE = 128  # TPU lane width; pad output columns to a multiple of this.


# ----------------------------------------------------------------------------
# Kernel: one MXU matmul, (B, A*T) @ (A*T, PN_pad) -> (B, PN_pad)
# ----------------------------------------------------------------------------
def _profiles_kernel(w_ref, act_ref, o_ref):
    # w_ref   : (A*T, PN_pad) VMEM  -- pre-tiled, pre-transposed, pre-padded weight
    # act_ref : (B,   A*T)    VMEM  -- actuators flattened over (actuator, time)
    # o_ref   : (B,   PN_pad) VMEM  -- lane-dense output (PN_pad % 128 == 0)
    o_ref[...] = jnp.dot(
        act_ref[...], w_ref[...], preferred_element_type=jnp.float32
    )


# ----------------------------------------------------------------------------
# One-time weight preparation (hoisted out of the forward path).
# ----------------------------------------------------------------------------
def prepare_weight(c, t_steps):
    """c: (1, P*nx, A) -> w: (A*T, PN_pad) with PN_pad a multiple of 128.

    w[a*T + t, :PN] == c[0, :, a] for every t, so that
    (B, A*T) @ w  ==  sum_t c @ act[..., t]   (T-reduce folded into the matmul).
    Padded columns are zero; they are sliced off in the wrapper.
    """
    pn, a = c.shape[1], c.shape[2]
    c_t = jnp.transpose(c[0])                      # (A, PN)
    w = jnp.repeat(c_t, t_steps, axis=0)           # (A*T, PN): row a repeated T times
    pn_pad = ((pn + _LANE - 1) // _LANE) * _LANE
    if pn_pad != pn:
        w = jnp.pad(w, ((0, 0), (0, pn_pad - pn)))
    return w


# ----------------------------------------------------------------------------
# Forward pass.
# ----------------------------------------------------------------------------
@functools.partial(jax.jit, static_argnames=("nprofiles", "nx"))
def profiles_from_actuators(w, input_profiles, input_actuators, input_parameters,
                            *, nprofiles, nx):
    """w: prepared weight (A*T, PN_pad); input_actuators: (B, A, T).

    Returns (B, nprofiles, nx).  input_profiles / input_parameters are unused
    by the original forward and are accepted only for signature parity.
    """
    del input_profiles, input_parameters  # unused by the forward pass
    b, a, t = input_actuators.shape
    pn = nprofiles * nx
    pn_pad = w.shape[1]
    assert w.shape[0] == a * t, "prepared weight does not match (A, T)"

    act_flat = input_actuators.reshape(b, a * t)   # contiguous: a-major, t-minor

    out = pl.pallas_call(
        _profiles_kernel,
        out_shape=jax.ShapeDtypeStruct((b, pn_pad), jnp.float32),
        in_specs=[
            pl.BlockSpec(memory_space=pltpu.MemorySpace.VMEM),  # shared weight
            pl.BlockSpec(memory_space=pltpu.MemorySpace.VMEM),  # actuator batch
        ],
        out_specs=pl.BlockSpec(memory_space=pltpu.MemorySpace.VMEM),
    )(w, act_flat)

    # Slice off lane padding, then metadata-only reshape to (B, P, nx).
    return out[:, :pn].reshape(b, nprofiles, nx)


if __name__ == "__main__":
    key = jax.random.PRNGKey(0)
    k_c, k_prof, k_act, k_par = jax.random.split(key, 4)

    # Parameter (torch.randn equivalent shape) and one-time weight prep.
    c = jax.random.normal(k_c, (1, NPROFILES * NX, NACTUATORS), dtype=jnp.float32)
    w = prepare_weight(c, T_STEPS)                 # hoisted: done once at init

    # Example inputs consistent with the forward pass.
    input_profiles = jax.random.normal(k_prof, (BATCH, NPROFILES, NX), dtype=jnp.float32)
    input_actuators = jax.random.normal(k_act, (BATCH, NACTUATORS, T_STEPS), dtype=jnp.float32)
    input_parameters = jax.random.normal(k_par, (BATCH, 3), dtype=jnp.float32)

    out = profiles_from_actuators(
        w, input_profiles, input_actuators, input_parameters,
        nprofiles=NPROFILES, nx=NX,
    )
    out = jax.block_until_ready(out)

    # Reference check in plain JAX (same math as PyTorch: bmm then sum over time).
    ref = jnp.einsum("pa,bat->bpt", c[0], input_actuators).sum(-1)
    ref = ref.reshape(BATCH, NPROFILES, NX)
    assert out.shape == (BATCH, NPROFILES, NX)
    # Reassociated f32 sum (folded into the contraction) -> slightly looser tol.
    assert jnp.allclose(out, ref, atol=1e-4, rtol=1e-5)

    print("KERNEL_OK")
</pallas_src>

<mosaic_0001>
module attributes {stable_mosaic.version = 11 : i64} {
  func.func @_profiles_kernel(%arg0: memref<64x128xf32, #tpu.memory_space<vmem>>, %arg1: memref<2x64xf32, #tpu.memory_space<vmem>>, %arg2: memref<2x128xf32, #tpu.memory_space<vmem>>) attributes {dimension_semantics = [], scalar_prefetch = 0 : i64, scratch_operands = 0 : i64, tpu.core_type = #tpu.core_type<tc>} {
    %c0 = arith.constant 0 : index
    %c0_0 = arith.constant 0 : index
    %0 = vector.load %arg1[%c0, %c0_0] : memref<2x64xf32, #tpu.memory_space<vmem>>, vector<2x64xf32>
    %c0_1 = arith.constant 0 : index
    %c0_2 = arith.constant 0 : index
    %1 = vector.load %arg0[%c0_1, %c0_2] : memref<64x128xf32, #tpu.memory_space<vmem>>, vector<64x128xf32>
    %cst = arith.constant dense<0.000000e+00> : vector<2x128xf32>
    %2 = tpu.matmul %0, %1, %cst {dimension_numbers = #tpu.dot_dimension_numbers<[1], [0], [0], [1], [0, 0, 1, 1], [], []>} : vector<2x64xf32>, vector<64x128xf32>, vector<2x128xf32> -> vector<2x128xf32>
    %c0_3 = arith.constant 0 : index
    %c0_4 = arith.constant 0 : index
    %3 = vector.load %arg2[%c0_3, %c0_4] : memref<2x128xf32, #tpu.memory_space<vmem>>, vector<2x128xf32>
    tpu.vector_store %arg2[%c0_3, %c0_4], %2 {strides = array<i32>} : memref<2x128xf32, #tpu.memory_space<vmem>>, vector<2x128xf32>,
    return
  }
}

</mosaic_0001>

<bundles_post_ra>
// kernel: profiles_from_actuators.1
= control target key start
LH: loop header
LB: loop body
LE: loop exit
PB: predicated region body
PF: predicated region fallthrough
CT: control target
= control target key end

     0   :  { %7 = vsyncpa [#allocation3], 0  ;;  %s170_s9 = smov [#allocation2]   ;;  %s199_s0 = inlined_call_operand.hbm [shape: f32[64,128], index: 0, kind: input, shape index: {}]   ;;  %s200_s1 = inlined_call_operand.vmem [shape: f32[2,64], index: 1, kind: input, shape index: {}]   ;;  %s201_s2 = inlined_call_operand.vmem [shape: f32[2,128], index: 2, kind: output, shape index: {}]  }
   0x1   :  { %s13_s10 = sshll.u32 %s170_s9, 4  ;;  %s14_s10 = int_to_ptr.vmem [resolvable:$true] %s13_s10 }
   0x2   :  { %s156_s11 = scalar_lea.vmem %s14_s10, 1024  ;;  %p161_p1 = scmp.lt.s32.totalorder %s14_s10, %s14_s10 }
   0x3   :  { %p157_p0 = scmp.ne.s32.totalorder %s14_s10, %s156_s11  ;;  %p162_p2 = scmp.lt.s32.totalorder %s156_s11, %s156_s11 }
   0x5   :  { %p163_p3 = por %p162_p2, %p161_p1 }
   0x7   :  { %p164_p4 = pnand %p163_p3, %p157_p0 }
   0x9   :  { %167 = shalt.err (!%p164_p4)
}
   0xa   :  { %s171_s12 = smov 128   ;;  %s172_s13 = smov 8  }
   0xb   :  { %19 = dma.hbm_to_vmem [thread:$0]  %s199_s0, 1024, %s14_s10, [#allocation3], %s171_s12, %s171_s12, %s172_s13  }
   0xc   :  { %168 = dma.done.wait [#allocation3], 1024  }
   0xd   :  { %169 = vsyncadd [#allocation3], 4294966272  ;;  %v173_v0 = vmov 0.0   ;;  %vm174_vm0 = vmmov 0   ;;  %v33_v1 = vld [vmem:[#allocation2 + $0x38] sm:$0xff]  ;;  %v32_v2 = vld [vmem:[#allocation2 + $0x30] sm:$0xff] }
   0xe   :  { %124 = vmatprep.subr.mxu0 %v173_v0  ;;  %140 = vmatprep.mubr.msk.f32.mxu0 %vm174_vm0, %v173_v0  ;;  %v31_v3 = vld [vmem:[#allocation2 + $0x28] sm:$0xff]  ;;  %v30_v4 = vld [vmem:[#allocation2 + $0x20] sm:$0xff]  ;;  %v29_v5 = vld [vmem:[#allocation2 + $0x18] sm:$0xff]  ;;  %vm34_vm1 = vcmask 523264  }
   0xf   :  { %125 = vmatpush3.msra.mxu0 %v33_v1  ;;  %v28_v6 = vld [vmem:[#allocation2 + $0x10] sm:$0xff]  ;;  %v27_v7 = vld [vmem:[#allocation2 + $0x8] sm:$0xff]  ;;  %v26_v8 = vld [vmem:[#allocation2] sm:$0xff] }
  0x10   :  { %126 = vmatprep.subr.mxu0 %v173_v0  ;;  %v25_v9 = vld [vmem:[%s200_s1] sm:$0x3] }
  0x11   :  { %127 = vmatpush3.msra.mxu0 %v32_v2 }
  0x12   :  { %128 = vmatprep.subr.mxu0 %v173_v0 }
  0x13   :  { %129 = vmatpush3.msra.mxu0 %v31_v3 }
  0x14   :  { %130 = vmatprep.subr.mxu0 %v173_v0 }
  0x15   :  { %131 = vmatpush3.msra.mxu0 %v30_v4 }
  0x16   :  { %132 = vmatprep.subr.mxu0 %v173_v0 }
  0x17   :  { %133 = vmatpush3.msra.mxu0 %v29_v5 }
  0x18   :  { %134 = vmatprep.subr.mxu0 %v173_v0 }
  0x19   :  { %135 = vmatpush3.msra.mxu0 %v28_v6 }
  0x1a   :  { %136 = vmatprep.subr.mxu0 %v173_v0 }
  0x1b   :  { %137 = vmatpush3.msra.mxu0 %v27_v7 }
  0x1c   :  { %138 = vmatprep.subr.mxu0 %v173_v0 }
  0x1d   :  { %139 = vmatpush3.msra.mxu0 %v26_v8 }
  0x1e   :  { %141 = vmatmul.mubr.msk.f32.vlgmr.msra.gmra.mxu0 %vm34_vm1, %v25_v9 }
  0xde   :  { %v104_v10 = vpop.f32.mrf.mxu0 }
  0xdf   :  { %108 = vst [vmem:[%s201_s2] sm:$0x3] %v104_v10 }
  0xe0   :  { %v142_v11 = vpop.f32.mrf.mxu0 }
  0xe1   :  { %113 = vsyncpa [#allocation3], 1 }

</bundles_post_ra>
